<compile_context>
chip_gen: v6e
topology: v6e:2x2x1
jax: 0.10.0
libtpu: 0.0.40
codegen_flags: <defaults>
</compile_context>

<pallas_src>
import functools

import jax
import jax.numpy as jnp
from jax.experimental import pallas as pl
from jax.experimental.pallas import tpu as pltpu


HIDDEN = 128
COMPUTE_DTYPE = jnp.bfloat16  # MXU-native; f32 accumulation inside the kernel.


def _round_up(v, m):
    return (v + m - 1) // m * m


def _dqn_kernel(x_ref, w1_ref, b1_ref, w2_ref, b2_ref, w3_ref, b3_ref, o_ref):
    # Fused 3-layer MLP on one batch tile. Dots run in bf16 -> f32 accumulate;
    # bias-add / ReLU stay f32, activations cast back to bf16 before each dot.
    x = x_ref[...]
    h1 = jnp.dot(x, w1_ref[...], preferred_element_type=jnp.float32) + b1_ref[...]
    h1 = jnp.maximum(h1, 0.0).astype(w2_ref.dtype)
    h2 = jnp.dot(h1, w2_ref[...], preferred_element_type=jnp.float32) + b2_ref[...]
    h2 = jnp.maximum(h2, 0.0).astype(w3_ref.dtype)
    o_ref[...] = (
        jnp.dot(h2, w3_ref[...], preferred_element_type=jnp.float32) + b3_ref[...]
    ).astype(o_ref.dtype)


def init_params(key, state_size, action_size):
    """Deterministic f32 master params mimicking nn.Linear init (U(+-1/sqrt(fan_in)))."""
    ks = jax.random.split(key, 6)

    def lin(kw, kb, fan_in, fan_out):
        bound = 1.0 / jnp.sqrt(jnp.float32(fan_in))
        w = jax.random.uniform(kw, (fan_in, fan_out), jnp.float32, -bound, bound)
        b = jax.random.uniform(kb, (fan_out,), jnp.float32, -bound, bound)
        return w, b

    w1, b1 = lin(ks[0], ks[1], state_size, HIDDEN)
    w2, b2 = lin(ks[2], ks[3], HIDDEN, HIDDEN)
    w3, b3 = lin(ks[4], ks[5], HIDDEN, action_size)
    return {"w1": w1, "b1": b1, "w2": w2, "b2": b2, "w3": w3, "b3": b3}


def prepare_params(params, compute_dtype=COMPUTE_DTYPE):
    """One-time prep: cast weights to compute dtype, pad the output layer to a
    128-multiple (lane-dense stores), and reshape biases to (1, N) f32 rows.
    Done ONCE, so the per-call forward has zero pad/scatter ops for weights."""
    action_size = int(params["w3"].shape[1])
    a_pad = _round_up(action_size, 128)
    w3_p = (
        jnp.zeros((HIDDEN, a_pad), compute_dtype)
        .at[:, :action_size]
        .set(params["w3"].astype(compute_dtype))
    )
    b3_p = (
        jnp.zeros((1, a_pad), jnp.float32)
        .at[:, :action_size]
        .set(params["b3"][None, :].astype(jnp.float32))
    )
    prep = {
        "w1": params["w1"].astype(compute_dtype),
        "b1": params["b1"][None, :].astype(jnp.float32),
        "w2": params["w2"].astype(compute_dtype),
        "b2": params["b2"][None, :].astype(jnp.float32),
        "w3": w3_p,
        "b3": b3_p,
    }
    return prep, action_size


@functools.partial(jax.jit, static_argnames=("action_size",))
def dqn_forward(x, prep, action_size):
    """x: (B, state_size) f32. prep: output of prepare_params. Returns (B, action_size) f32."""
    w1, b1 = prep["w1"], prep["b1"]
    w2, b2 = prep["w2"], prep["b2"]
    w3, b3 = prep["w3"], prep["b3"]

    B, S = x.shape
    a_pad = w3.shape[1]

    # Batch tile: fill the MXU at training-size batches, single small block at
    # inference-size batches (grid overhead ~0.35us/step would dominate there).
    # TB=512 keeps double-buffered blocks tiny (<1 MiB), safe for v7x's 64 MiB VMEM.
    if B >= 512:
        tb = 512
    elif B >= 256:
        tb = 256
    else:
        tb = _round_up(B, 8)
    bp = _round_up(B, tb)

    x_c = x.astype(w1.dtype)
    if bp != B:
        x_c = jnp.zeros((bp, S), w1.dtype).at[:B, :].set(x_c)

    grid = (bp // tb,)

    itemsize = jnp.dtype(w1.dtype).itemsize
    cost = pl.CostEstimate(
        flops=2 * bp * (S * HIDDEN + HIDDEN * HIDDEN + HIDDEN * a_pad),
        transcendentals=0,
        bytes_accessed=(
            bp * S * itemsize
            + (S * HIDDEN + HIDDEN * HIDDEN + HIDDEN * a_pad) * itemsize
            + (2 * HIDDEN + a_pad) * 4
            + bp * a_pad * 4
        ),
    )

    out_p = pl.pallas_call(
        _dqn_kernel,
        out_shape=jax.ShapeDtypeStruct((bp, a_pad), jnp.float32),
        grid=grid,
        in_specs=[
            pl.BlockSpec((tb, S), lambda i: (i, 0)),          # x tile (no S padding: S = full dim)
            pl.BlockSpec((S, HIDDEN), lambda i: (0, 0)),      # w1, resident across batch tiles
            pl.BlockSpec((1, HIDDEN), lambda i: (0, 0)),      # b1
            pl.BlockSpec((HIDDEN, HIDDEN), lambda i: (0, 0)), # w2
            pl.BlockSpec((1, HIDDEN), lambda i: (0, 0)),      # b2
            pl.BlockSpec((HIDDEN, a_pad), lambda i: (0, 0)),  # w3 (N padded to 128 once, at prep)
            pl.BlockSpec((1, a_pad), lambda i: (0, 0)),       # b3
        ],
        out_specs=pl.BlockSpec((tb, a_pad), lambda i: (i, 0)),
        compiler_params=pltpu.CompilerParams(
            dimension_semantics=("parallel",),
        ),
        cost_estimate=cost,
    )(x_c, w1, b1, w2, b2, w3, b3)

    return out_p[:B, :action_size]


def _ref_forward_bf16(x, params, compute_dtype=COMPUTE_DTYPE):
    """Pure-JAX reference with the same bf16-dot / f32-accumulate recipe as the kernel."""
    cd = compute_dtype
    h = jnp.dot(x.astype(cd), params["w1"].astype(cd),
                preferred_element_type=jnp.float32) + params["b1"]
    h = jnp.maximum(h, 0.0)
    h = jnp.dot(h.astype(cd), params["w2"].astype(cd),
                preferred_element_type=jnp.float32) + params["b2"]
    h = jnp.maximum(h, 0.0)
    return jnp.dot(h.astype(cd), params["w3"].astype(cd),
                   preferred_element_type=jnp.float32) + params["b3"]


def _ref_forward_f32(x, params):
    h = jnp.maximum(x @ params["w1"] + params["b1"], 0.0)
    h = jnp.maximum(h @ params["w2"] + params["b2"], 0.0)
    return h @ params["w3"] + params["b3"]


if __name__ == "__main__":
    state_size, action_size, batch = 16, 4, 2
    key = jax.random.PRNGKey(0)
    kp, kx = jax.random.split(key)

    params = init_params(kp, state_size, action_size)
    prep, a_size = prepare_params(params)           # one-time pad + cast (off the hot path)
    x = jax.random.normal(kx, (batch, state_size), jnp.float32)

    out = dqn_forward(x, prep, a_size)
    out = jax.block_until_ready(out)
    assert out.shape == (batch, action_size)

    # Exact-recipe check (same bf16 dots / f32 accumulate as the kernel).
    ref_bf16 = _ref_forward_bf16(x, params)
    assert jnp.allclose(out, ref_bf16, atol=2e-3, rtol=2e-3), (
        float(jnp.max(jnp.abs(out - ref_bf16)))
    )

    # Loose check against the original f32 PyTorch-equivalent forward.
    ref_f32 = _ref_forward_f32(x, params)
    assert jnp.allclose(out, ref_f32, atol=5e-2, rtol=5e-2), (
        float(jnp.max(jnp.abs(out - ref_f32)))
    )

    print("KERNEL_OK")
</pallas_src>

<mosaic_0001>
module attributes {stable_mosaic.version = 11 : i64} {
  func.func @_dqn_kernel(%arg0: i32, %arg1: memref<8x16xbf16, #tpu.memory_space<vmem>>, %arg2: memref<16x128xbf16, #tpu.memory_space<vmem>>, %arg3: memref<1x128xf32, #tpu.memory_space<vmem>>, %arg4: memref<128x128xbf16, #tpu.memory_space<vmem>>, %arg5: memref<1x128xf32, #tpu.memory_space<vmem>>, %arg6: memref<128x128xbf16, #tpu.memory_space<vmem>>, %arg7: memref<1x128xf32, #tpu.memory_space<vmem>>, %arg8: memref<8x128xf32, #tpu.memory_space<vmem>>) attributes {dimension_semantics = [#tpu.dimension_semantics<parallel>], iteration_bounds = array<i64: 1>, scalar_prefetch = 0 : i64, scratch_operands = 0 : i64, tpu.core_type = #tpu.core_type<tc>, window_params = [{transform_indices = @transform_0, window_bounds = array<i64: 8, 16>}, {pipeline_mode = #tpu.pipeline_mode<synchronous>, transform_indices = @transform_1, window_bounds = array<i64: 16, 128>}, {pipeline_mode = #tpu.pipeline_mode<synchronous>, transform_indices = @transform_2, window_bounds = array<i64: 1, 128>}, {pipeline_mode = #tpu.pipeline_mode<synchronous>, transform_indices = @transform_3, window_bounds = array<i64: 128, 128>}, {pipeline_mode = #tpu.pipeline_mode<synchronous>, transform_indices = @transform_4, window_bounds = array<i64: 1, 128>}, {pipeline_mode = #tpu.pipeline_mode<synchronous>, transform_indices = @transform_5, window_bounds = array<i64: 128, 128>}, {pipeline_mode = #tpu.pipeline_mode<synchronous>, transform_indices = @transform_6, window_bounds = array<i64: 1, 128>}, {transform_indices = @transform_7, window_bounds = array<i64: 8, 128>}]} {
    %c0 = arith.constant 0 : index
    %c0_0 = arith.constant 0 : index
    %0 = vector.load %arg1[%c0, %c0_0] : memref<8x16xbf16, #tpu.memory_space<vmem>>, vector<8x16xbf16>
    %c0_1 = arith.constant 0 : index
    %c0_2 = arith.constant 0 : index
    %1 = vector.load %arg2[%c0_1, %c0_2] : memref<16x128xbf16, #tpu.memory_space<vmem>>, vector<16x128xbf16>
    %cst = arith.constant dense<0.000000e+00> : vector<8x128xf32>
    %2 = tpu.matmul %0, %1, %cst {dimension_numbers = #tpu.dot_dimension_numbers<[1], [0], [0], [1], [0, 0, 1, 1], [], []>} : vector<8x16xbf16>, vector<16x128xbf16>, vector<8x128xf32> -> vector<8x128xf32>
    %c0_3 = arith.constant 0 : index
    %c0_4 = arith.constant 0 : index
    %3 = vector.load %arg3[%c0_3, %c0_4] : memref<1x128xf32, #tpu.memory_space<vmem>>, vector<1x128xf32>
    %4 = vector.broadcast %3 : vector<1x128xf32> to vector<8x128xf32>
    %5 = arith.addf %2, %4 : vector<8x128xf32>
    %cst_5 = arith.constant 0.000000e+00 : f32
    %6 = vector.broadcast %cst_5 : f32 to vector<8x128xf32>
    %7 = arith.maximumf %5, %6 : vector<8x128xf32>
    %8 = arith.truncf %7 : vector<8x128xf32> to vector<8x128xbf16>
    %c0_6 = arith.constant 0 : index
    %c0_7 = arith.constant 0 : index
    %9 = vector.load %arg4[%c0_6, %c0_7] : memref<128x128xbf16, #tpu.memory_space<vmem>>, vector<128x128xbf16>
    %cst_8 = arith.constant dense<0.000000e+00> : vector<8x128xf32>
    %10 = tpu.matmul %8, %9, %cst_8 {dimension_numbers = #tpu.dot_dimension_numbers<[1], [0], [0], [1], [0, 0, 1, 1], [], []>} : vector<8x128xbf16>, vector<128x128xbf16>, vector<8x128xf32> -> vector<8x128xf32>
    %c0_9 = arith.constant 0 : index
    %c0_10 = arith.constant 0 : index
    %11 = vector.load %arg5[%c0_9, %c0_10] : memref<1x128xf32, #tpu.memory_space<vmem>>, vector<1x128xf32>
    %12 = vector.broadcast %11 : vector<1x128xf32> to vector<8x128xf32>
    %13 = arith.addf %10, %12 : vector<8x128xf32>
    %cst_11 = arith.constant 0.000000e+00 : f32
    %14 = vector.broadcast %cst_11 : f32 to vector<8x128xf32>
    %15 = arith.maximumf %13, %14 : vector<8x128xf32>
    %16 = arith.truncf %15 : vector<8x128xf32> to vector<8x128xbf16>
    %c0_12 = arith.constant 0 : index
    %c0_13 = arith.constant 0 : index
    %17 = vector.load %arg6[%c0_12, %c0_13] : memref<128x128xbf16, #tpu.memory_space<vmem>>, vector<128x128xbf16>
    %cst_14 = arith.constant dense<0.000000e+00> : vector<8x128xf32>
    %18 = tpu.matmul %16, %17, %cst_14 {dimension_numbers = #tpu.dot_dimension_numbers<[1], [0], [0], [1], [0, 0, 1, 1], [], []>} : vector<8x128xbf16>, vector<128x128xbf16>, vector<8x128xf32> -> vector<8x128xf32>
    %c0_15 = arith.constant 0 : index
    %c0_16 = arith.constant 0 : index
    %19 = vector.load %arg7[%c0_15, %c0_16] : memref<1x128xf32, #tpu.memory_space<vmem>>, vector<1x128xf32>
    %20 = vector.broadcast %19 : vector<1x128xf32> to vector<8x128xf32>
    %21 = arith.addf %18, %20 : vector<8x128xf32>
    %c0_17 = arith.constant 0 : index
    %c0_18 = arith.constant 0 : index
    %22 = vector.load %arg8[%c0_17, %c0_18] : memref<8x128xf32, #tpu.memory_space<vmem>>, vector<8x128xf32>
    tpu.vector_store %arg8[%c0_17, %c0_18], %21 {strides = array<i32>} : memref<8x128xf32, #tpu.memory_space<vmem>>, vector<8x128xf32>,
    return
  }
  func.func @transform_0(%arg0: i32) -> (i32, i32) {
    %c0_i32 = arith.constant 0 : i32
    %c0_i32_0 = arith.constant 0 : i32
    return %arg0, %c0_i32 : i32, i32
  }
  func.func @transform_1(%arg0: i32) -> (i32, i32) {
    %c0_i32 = arith.constant 0 : i32
    %c0_i32_0 = arith.constant 0 : i32
    %c0_i32_1 = arith.constant 0 : i32
    return %c0_i32, %c0_i32_0 : i32, i32
  }
  func.func @transform_2(%arg0: i32) -> (i32, i32) {
    %c0_i32 = arith.constant 0 : i32
    %c0_i32_0 = arith.constant 0 : i32
    %c0_i32_1 = arith.constant 0 : i32
    return %c0_i32, %c0_i32_0 : i32, i32
  }
  func.func @transform_3(%arg0: i32) -> (i32, i32) {
    %c0_i32 = arith.constant 0 : i32
    %c0_i32_0 = arith.constant 0 : i32
    %c0_i32_1 = arith.constant 0 : i32
    return %c0_i32, %c0_i32_0 : i32, i32
  }
  func.func @transform_4(%arg0: i32) -> (i32, i32) {
    %c0_i32 = arith.constant 0 : i32
    %c0_i32_0 = arith.constant 0 : i32
    %c0_i32_1 = arith.constant 0 : i32
    return %c0_i32, %c0_i32_0 : i32, i32
  }
  func.func @transform_5(%arg0: i32) -> (i32, i32) {
    %c0_i32 = arith.constant 0 : i32
    %c0_i32_0 = arith.constant 0 : i32
    %c0_i32_1 = arith.constant 0 : i32
    return %c0_i32, %c0_i32_0 : i32, i32
  }
  func.func @transform_6(%arg0: i32) -> (i32, i32) {
    %c0_i32 = arith.constant 0 : i32
    %c0_i32_0 = arith.constant 0 : i32
    %c0_i32_1 = arith.constant 0 : i32
    return %c0_i32, %c0_i32_0 : i32, i32
  }
  func.func @transform_7(%arg0: i32) -> (i32, i32) {
    %c0_i32 = arith.constant 0 : i32
    %c0_i32_0 = arith.constant 0 : i32
    return %arg0, %c0_i32 : i32, i32
  }
}

</mosaic_0001>

<bundles_post_ra>
// kernel: dqn_forward.1
= control target key start
LH: loop header
LB: loop body
LE: loop exit
PB: predicated region body
PF: predicated region fallthrough
CT: control target
= control target key end

     0   :  { %12 = vsyncpa [#allocation3], 0  ;;  %s592_s0 = inlined_call_operand.vmem [shape: bf16[8,16], index: 0, kind: input, shape index: {}]   ;;  %s593_s1 = inlined_call_operand.vmem [shape: bf16[16,128], index: 1, kind: input, shape index: {}]   ;;  %s594_s2 = inlined_call_operand.vmem [shape: f32[1,128], index: 2, kind: input, shape index: {}]   ;;  %s595_s3 = inlined_call_operand.hbm [shape: bf16[128,128], index: 3, kind: input, shape index: {}]   ;;  %s596_s4 = inlined_call_operand.vmem [shape: f32[1,128], index: 4, kind: input, shape index: {}]   ;;  %s597_s5 = inlined_call_operand.hbm [shape: bf16[128,128], index: 5, kind: input, shape index: {}]   ;;  %s598_s6 = inlined_call_operand.vmem [shape: f32[1,128], index: 6, kind: input, shape index: {}]   ;;  %s599_s7 = inlined_call_operand.vmem [shape: f32[8,128], index: 7, kind: output, shape index: {}]  }
   0x1   :  { %13 = vsyncpa [#allocation5], 0  ;;  %s502_s24 = smov [#allocation2]  }
   0x2   :  { %s25_s25 = sshll.u32 %s502_s24, 4  ;;  %s26_s25 = int_to_ptr.vmem [resolvable:$true] %s25_s25 }
   0x3   :  { %s466_s26 = scalar_lea.vmem %s26_s25, 1024  ;;  %p471_p1 = scmp.lt.s32.totalorder %s26_s25, %s26_s25 }
   0x4   :  { %p467_p0 = scmp.ne.s32.totalorder %s26_s25, %s466_s26  ;;  %p472_p2 = scmp.lt.s32.totalorder %s466_s26, %s466_s26 }
   0x6   :  { %p473_p3 = por %p472_p2, %p471_p1 }
   0x8   :  { %p474_p4 = pnand %p473_p3, %p467_p0 }
   0xa   :  { %477 = shalt.err (!%p474_p4)
}
   0xb   :  { %s503_s27 = smov 64   ;;  %s504_s28 = smov 4  }
   0xc   :  { %31 = dma.hbm_to_vmem [thread:$0]  %s595_s3, 1024, %s26_s25, [#allocation3], %s503_s27, %s503_s27, %s504_s28  }
   0xd   :  { %s505_s8 = smov [#allocation4]  }
   0xe   :  { %s39_s9 = sshll.u32 %s505_s8, 4  ;;  %s40_s9 = int_to_ptr.vmem [resolvable:$true] %s39_s9 }
   0xf   :  { %s486_s10 = scalar_lea.vmem %s40_s9, 1024  ;;  %p491_p6 = scmp.lt.s32.totalorder %s40_s9, %s40_s9 }
  0x10   :  { %p487_p5 = scmp.ne.s32.totalorder %s40_s9, %s486_s10  ;;  %p492_p7 = scmp.lt.s32.totalorder %s486_s10, %s486_s10 }
  0x12   :  { %p493_p8 = por %p492_p7, %p491_p6 }
  0x14   :  { %p494_p9 = pnand %p493_p8, %p487_p5 }
  0x16   :  { %497 = shalt.err (!%p494_p9)
}
  0x17   :  { %45 = dma.hbm_to_vmem [thread:$0]  %s597_s5, 1024, %s40_s9, [#allocation5], %s503_s27, %s503_s27, %s504_s28  }
  0x18   :  { %498 = dma.done.wait [#allocation3], 1024  }
  0x19   :  { %499 = vsyncadd [#allocation3], 4294966272 }
  0x1a   :  { %500 = dma.done.wait [#allocation5], 1024  }
  0x1b   :  { %501 = vsyncadd [#allocation5], 4294966272  ;;  %v506_v0 = vmov 0.0   ;;  %vm507_vm0 = vmmov 0   ;;  %v441_v1 = vld [vmem:[%s593_s1] sm:$0xff]   ;;  %vm71_vm1 = vcmask 130048  }
  0x1c   :  { %389 = vmatprep.subr.bf16.mxu0 %v506_v0  ;;  %391 = vmatprep.mubr.msk.bf16.mxu0 %vm507_vm0, %v506_v0  ;;  %v55_v2 = vld [vmem:[%s592_s0] sm:$0xf]  ;;  %v442_v3 = vld [vmem:[#allocation2 + $0x38] sm:$0xff]   ;;  %v443_v4 = vld [vmem:[#allocation2 + $0x30] sm:$0xff]  }
  0x1d   :  { %395 = vmatprep.subr.bf16.mxu1 %v506_v0  ;;  %411 = vmatprep.mubr.msk.bf16.mxu1 %vm507_vm0, %v506_v0  ;;  %v444_v5 = vld [vmem:[#allocation2 + $0x28] sm:$0xff]   ;;  %v445_v6 = vld [vmem:[#allocation2 + $0x20] sm:$0xff]   ;;  %v446_v7 = vld [vmem:[#allocation2 + $0x18] sm:$0xff]  }
  0x1e   :  { %390 = vmatpush3.bf16.msra.mxu0 %v441_v1  ;;  %396 = vmatpush3.bf16.msra.mxu1 %v442_v3  ;;  %v447_v8 = vld [vmem:[#allocation2 + $0x10] sm:$0xff]   ;;  %v448_v9 = vld [vmem:[#allocation2 + $0x8] sm:$0xff]   ;;  %v449_v10 = vld [vmem:[#allocation2] sm:$0xff]  }
  0x1f   :  { %415 = vmatprep.subr.bf16.mxu0 %v506_v0  ;;  %397 = vmatprep.subr.bf16.mxu1 %v506_v0  ;;  %v450_v11 = vld [vmem:[#allocation4 + $0x38] sm:$0xff]   ;;  %v451_v12 = vld [vmem:[#allocation4 + $0x30] sm:$0xff]   ;;  %v452_v13 = vld [vmem:[#allocation4 + $0x28] sm:$0xff]  }
  0x20   :  { %v453_v14 = vld [vmem:[#allocation4 + $0x20] sm:$0xff]   ;;  %v454_v15 = vld [vmem:[#allocation4 + $0x18] sm:$0xff]   ;;  %v455_v16 = vld [vmem:[#allocation4 + $0x10] sm:$0xff]  }
  0x21   :  { %392 = vmatmul.mubr.msk.bf16.vlgmr.msra.gmra.mxu0 %vm71_vm1, %v55_v2  ;;  %v348_v17 = vld [vmem:[%s594_s2] ss:$0 sm:$0xff]  ;;  %v456_v25 = vld [vmem:[#allocation4 + $0x8] sm:$0xff]  }
  0x22   :  { %431 = vmatprep.mubr.msk.bf16.mxu0 %vm507_vm0, %v506_v0  ;;  %398 = vmatpush3.bf16.msra.mxu1 %v443_v4  ;;  %v457_v26 = vld [vmem:[#allocation4] sm:$0xff]  }
  0x23   :  { %399 = vmatprep.subr.bf16.mxu1 %v506_v0  ;;  %416 = vmatpush3.bf16.msra.mxu0 %v450_v11  ;;  %v351_v27 = vld [vmem:[%s596_s4] ss:$0 sm:$0xff] }
  0x24   :  { %417 = vmatprep.subr.bf16.mxu0 %v506_v0  ;;  %v360_v35 = vld [vmem:[%s598_s6] ss:$0 sm:$0xff] }
  0x26   :  { %400 = vmatpush3.bf16.msra.mxu1 %v444_v5 }
  0x27   :  { %401 = vmatprep.subr.bf16.mxu1 %v506_v0  ;;  %418 = vmatpush3.bf16.msra.mxu0 %v451_v12 }
  0x28   :  { %419 = vmatprep.subr.bf16.mxu0 %v506_v0 }
  0x2a   :  { %402 = vmatpush3.bf16.msra.mxu1 %v445_v6 }
  0x2b   :  { %403 = vmatprep.subr.bf16.mxu1 %v506_v0  ;;  %420 = vmatpush3.bf16.msra.mxu0 %v452_v13 }
  0x2c   :  { %421 = vmatprep.subr.bf16.mxu0 %v506_v0 }
  0x2e   :  { %404 = vmatpush3.bf16.msra.mxu1 %v446_v7 }
  0x2f   :  { %405 = vmatprep.subr.bf16.mxu1 %v506_v0  ;;  %422 = vmatpush3.bf16.msra.mxu0 %v453_v14 }
  0x30   :  { %423 = vmatprep.subr.bf16.mxu0 %v506_v0 }
  0x32   :  { %406 = vmatpush3.bf16.msra.mxu1 %v447_v8 }
  0x33   :  { %407 = vmatprep.subr.bf16.mxu1 %v506_v0  ;;  %424 = vmatpush3.bf16.msra.mxu0 %v454_v15 }
  0x34   :  { %425 = vmatprep.subr.bf16.mxu0 %v506_v0 }
  0x36   :  { %408 = vmatpush3.bf16.msra.mxu1 %v448_v9 }
  0x37   :  { %409 = vmatprep.subr.bf16.mxu1 %v506_v0  ;;  %426 = vmatpush3.bf16.msra.mxu0 %v455_v16 }
  0x38   :  { %427 = vmatprep.subr.bf16.mxu0 %v506_v0 }
  0x3a   :  { %410 = vmatpush3.bf16.msra.mxu1 %v449_v10 }
  0x3b   :  { %428 = vmatpush3.bf16.msra.mxu0 %v456_v25 }
  0x3c   :  { %429 = vmatprep.subr.bf16.mxu0 %v506_v0 }
  0x3f   :  { %430 = vmatpush3.bf16.msra.mxu0 %v457_v26 }
  0xe1   :  { %v109_v18 = vpop.f32.mrf.mxu0 }
  0xe2   :  { %v110_v19 = vadd.f32 %v348_v17, %v109_v18 }
  0xe3   :  { %v393_v20 = vpop.f32.mrf.mxu0 }
  0xe4   :  { %v115_v21 = vmax.f32 %v110_v19, 0.0 }
  0xe5   :  { %v112_v22 = vpop.f32.mrf.mxu0 }
  0xe6   :  { %v116_v23 = vpack.c.bf16 %v115_v21, %v115_v21 }
  0xe7   :  { %v394_v24 = vpop.f32.mrf.mxu0 }
  0xe8   :  { %412 = vmatmul.mubr.bf16.vlgmr.msra.gmra.mxu1 %v116_v23 }
 0x1a8   :  { %v222_v28 = vpop.f32.mrf.mxu1 }
 0x1a9   :  { %v223_v29 = vadd.f32 %v351_v27, %v222_v28 }
 0x1aa   :  { %v413_v30 = vpop.f32.mrf.mxu1 }
 0x1ab   :  { %v228_v31 = vmax.f32 %v223_v29, 0.0 }
 0x1ac   :  { %v225_v32 = vpop.f32.mrf.mxu1 }
 0x1ad   :  { %v229_v33 = vpack.c.bf16 %v228_v31, %v228_v31 }
 0x1ae   :  { %v414_v34 = vpop.f32.mrf.mxu1 }
 0x1af   :  { %432 = vmatmul.mubr.bf16.vlgmr.msra.gmra.mxu0 %v229_v33 }
 0x26f   :  { %v335_v36 = vpop.f32.mrf.mxu0 }
 0x270   :  { %v336_v37 = vadd.f32 %v360_v35, %v335_v36 }
 0x271   :  { %v433_v38 = vpop.f32.mrf.mxu0 }
 0x272   :  { %341 = vst [vmem:[%s599_s7] sm:$0xff] %v336_v37 }
 0x273   :  { %v338_v39 = vpop.f32.mrf.mxu0 }
 0x275   :  { %v434_v40 = vpop.f32.mrf.mxu0 }
 0x276   :  { %346 = vsyncpa [#allocation3], 1 }
 0x277   :  { %347 = vsyncpa [#allocation5], 1 }

</bundles_post_ra>
